<compile_context>
chip_gen: v6e
topology: v6e:2x2x1
jax: 0.10.0
libtpu: 0.0.40
codegen_flags: <defaults>
</compile_context>

<pallas_src>
import functools

import jax
import jax.numpy as jnp
import numpy as np
from jax.experimental import pallas as pl
from jax.experimental.pallas import tpu as pltpu

BN_EPS = 1e-5
_VMEM_LIMIT = 32 * 1024 * 1024  # v7x-safe (64 MiB physical); >= scoped default on all gens.


def _spatial_tile(hw, cap=2048):
    """Largest multiple-of-128 divisor of hw (<= cap); falls back to the full dim."""
    best = hw
    t = 128
    while t <= min(hw, cap):
        if hw % t == 0:
            best = t
        t += 128
    return best


def _conv3x3_masks(H, W):
    """(9, H*W) 0/1 masks; tap k=(dh+1)*3+(dw+1) is valid where (h+dh, w+dw) is in-image."""
    r = np.arange(H)[:, None]
    c = np.arange(W)[None, :]
    ms = []
    for dh in (-1, 0, 1):
        for dw in (-1, 0, 1):
            ok = (r + dh >= 0) & (r + dh < H) & (c + dw >= 0) & (c + dw < W)
            ms.append(ok.reshape(-1))
    return jnp.asarray(np.stack(ms), dtype=jnp.float32)


def _finalize_bn(partial_stats, gamma, beta, count):
    """(G, F, 2) per-tile [sum, sum_sq]  ->  fused per-channel (scale, shift), each (F, 1)."""
    tot = jnp.sum(partial_stats, axis=0)                      # (F, 2)
    mean = tot[:, 0] / count
    var = jnp.maximum(tot[:, 1] / count - mean * mean, 0.0)   # biased variance
    scale = gamma.reshape(-1) * jax.lax.rsqrt(var + BN_EPS)
    shift = beta.reshape(-1) - mean * scale
    return scale.reshape(-1, 1), shift.reshape(-1, 1)


@functools.lru_cache(maxsize=None)
def make_identity_block(N, C, H, W, filters):
    """Returns a jitted forward: (x_nchw, params) -> y_nchw for static shapes."""
    F0, F1, F2 = filters
    HW = H * W
    M = N * HW                      # BN normalization count
    T = _spatial_tile(HW)           # spatial tile for the pointwise passes
    S = HW // T
    use_cn = (C != F2)
    masks = _conv3x3_masks(H, W)    # compile-time constant

    cp2 = pltpu.CompilerParams(dimension_semantics=("parallel", "parallel"),
                               vmem_limit_bytes=_VMEM_LIMIT)
    cp1 = pltpu.CompilerParams(dimension_semantics=("parallel",),
                               vmem_limit_bytes=_VMEM_LIMIT)

    # ---- pass 1: 1x1 conv C -> F0 (bf16 MXU) + partial BN1 stats ---------------------
    def conv1_kernel(x_ref, w_ref, h_ref, st_ref):
        h = jnp.dot(w_ref[...].astype(jnp.bfloat16),
                    x_ref[0].astype(jnp.bfloat16),
                    preferred_element_type=jnp.float32)            # (F0, T)
        h_ref[0] = h
        st_ref[0, :, 0:1] = jnp.sum(h, axis=1, keepdims=True)
        st_ref[0, :, 1:2] = jnp.sum(h * h, axis=1, keepdims=True)

    conv1 = pl.pallas_call(
        conv1_kernel,
        grid=(N, S),
        in_specs=[pl.BlockSpec((1, C, T), lambda n, s: (n, 0, s)),
                  pl.BlockSpec((F0, C), lambda n, s: (0, 0))],
        out_specs=[pl.BlockSpec((1, F0, T), lambda n, s: (n, 0, s)),
                   pl.BlockSpec((1, F0, 2), lambda n, s: (n * S + s, 0, 0))],
        out_shape=[jax.ShapeDtypeStruct((N, F0, HW), jnp.float32),
                   jax.ShapeDtypeStruct((N * S, F0, 2), jnp.float32)],
        compiler_params=cp2,
    )

    # ---- pass 2: BN1 + ReLU, 3x3 conv as ONE im2col matmul, partial BN2 stats --------
    # TODO(synk): for very large images, additionally tile H with a 1-row halo exchange;
    # here one image per grid step is already well inside the VMEM budget.
    def conv2_kernel(h1_ref, sc_ref, sh_ref, w_ref, m_ref, h2_ref, st_ref):
        h1n = jnp.maximum(h1_ref[0] * sc_ref[...] + sh_ref[...], 0.0)   # (F0, HW) f32
        taps = []
        k = 0
        for dh in (-1, 0, 1):
            for dw in (-1, 0, 1):
                delta = dh * W + dw                    # flat source offset of this tap
                shifted = h1n if delta == 0 else pltpu.roll(
                    h1n, shift=(-delta) % HW, axis=1)  # out[p] = h1n[p + delta]
                taps.append(shifted * m_ref[k:k + 1, :])   # zero out-of-image taps
                k += 1
        patches = jnp.concatenate(taps, axis=0).astype(jnp.bfloat16)     # (9*F0, HW)
        h2 = jnp.dot(w_ref[...].astype(jnp.bfloat16), patches,
                     preferred_element_type=jnp.float32)                 # (F1, HW)
        h2_ref[0] = h2
        st_ref[0, :, 0:1] = jnp.sum(h2, axis=1, keepdims=True)
        st_ref[0, :, 1:2] = jnp.sum(h2 * h2, axis=1, keepdims=True)

    conv2 = pl.pallas_call(
        conv2_kernel,
        grid=(N,),
        in_specs=[pl.BlockSpec((1, F0, HW), lambda n: (n, 0, 0)),
                  pl.BlockSpec((F0, 1), lambda n: (0, 0)),
                  pl.BlockSpec((F0, 1), lambda n: (0, 0)),
                  pl.BlockSpec((F1, 9 * F0), lambda n: (0, 0)),
                  pl.BlockSpec((9, HW), lambda n: (0, 0))],
        out_specs=[pl.BlockSpec((1, F1, HW), lambda n: (n, 0, 0)),
                   pl.BlockSpec((1, F1, 2), lambda n: (n, 0, 0))],
        out_shape=[jax.ShapeDtypeStruct((N, F1, HW), jnp.float32),
                   jax.ShapeDtypeStruct((N, F1, 2), jnp.float32)],
        compiler_params=cp1,
    )

    # ---- pass 3: BN2 + ReLU, 1x1 conv F1 -> F2, partial BN3 stats --------------------
    def conv3_kernel(h2_ref, sc_ref, sh_ref, w_ref, h3_ref, st_ref):
        h2n = jnp.maximum(h2_ref[0] * sc_ref[...] + sh_ref[...], 0.0)
        h3 = jnp.dot(w_ref[...].astype(jnp.bfloat16),
                     h2n.astype(jnp.bfloat16),
                     preferred_element_type=jnp.float32)              # (F2, T)
        h3_ref[0] = h3
        st_ref[0, :, 0:1] = jnp.sum(h3, axis=1, keepdims=True)
        st_ref[0, :, 1:2] = jnp.sum(h3 * h3, axis=1, keepdims=True)

    conv3 = pl.pallas_call(
        conv3_kernel,
        grid=(N, S),
        in_specs=[pl.BlockSpec((1, F1, T), lambda n, s: (n, 0, s)),
                  pl.BlockSpec((F1, 1), lambda n, s: (0, 0)),
                  pl.BlockSpec((F1, 1), lambda n, s: (0, 0)),
                  pl.BlockSpec((F2, F1), lambda n, s: (0, 0))],
        out_specs=[pl.BlockSpec((1, F2, T), lambda n, s: (n, 0, s)),
                   pl.BlockSpec((1, F2, 2), lambda n, s: (n * S + s, 0, 0))],
        out_shape=[jax.ShapeDtypeStruct((N, F2, HW), jnp.float32),
                   jax.ShapeDtypeStruct((N * S, F2, 2), jnp.float32)],
        compiler_params=cp2,
    )

    # ---- pass 4: BN3, skip branch (1x1 projection or identity), final ReLU -----------
    if use_cn:
        def out_kernel(h3_ref, sc_ref, sh_ref, x_ref, wsk_ref, bsk_ref, o_ref):
            h3n = h3_ref[0] * sc_ref[...] + sh_ref[...]
            skip = jnp.dot(wsk_ref[...].astype(jnp.bfloat16),
                           x_ref[0].astype(jnp.bfloat16),
                           preferred_element_type=jnp.float32) + bsk_ref[...]
            o_ref[0] = jnp.maximum(skip + h3n, 0.0)

        out_in_specs = [pl.BlockSpec((1, F2, T), lambda n, s: (n, 0, s)),
                        pl.BlockSpec((F2, 1), lambda n, s: (0, 0)),
                        pl.BlockSpec((F2, 1), lambda n, s: (0, 0)),
                        pl.BlockSpec((1, C, T), lambda n, s: (n, 0, s)),
                        pl.BlockSpec((F2, C), lambda n, s: (0, 0)),
                        pl.BlockSpec((F2, 1), lambda n, s: (0, 0))]
    else:
        def out_kernel(h3_ref, sc_ref, sh_ref, x_ref, o_ref):
            h3n = h3_ref[0] * sc_ref[...] + sh_ref[...]
            o_ref[0] = jnp.maximum(x_ref[0] + h3n, 0.0)

        out_in_specs = [pl.BlockSpec((1, F2, T), lambda n, s: (n, 0, s)),
                        pl.BlockSpec((F2, 1), lambda n, s: (0, 0)),
                        pl.BlockSpec((F2, 1), lambda n, s: (0, 0)),
                        pl.BlockSpec((1, C, T), lambda n, s: (n, 0, s))]

    out_call = pl.pallas_call(
        out_kernel,
        grid=(N, S),
        in_specs=out_in_specs,
        out_specs=pl.BlockSpec((1, F2, T), lambda n, s: (n, 0, s)),
        out_shape=jax.ShapeDtypeStruct((N, F2, HW), jnp.float32),
        compiler_params=cp2,
    )

    def forward(x_nchw, params):
        (w1, b1, g1, be1, w2, b2, g2, be2, w3, b3, g3, be3, wsk, bsk) = params
        del b1, b2, b3  # bias-before-BatchNorm is exactly cancelled by the mean subtraction
        x = x_nchw.reshape(N, C, HW)          # free reshape -- no NCHW<->NHWC transpose
        w1t = w1.T                             # (F0, C)
        w2cf = w2.reshape(9 * F0, F1).T        # (F1, 9*F0)
        w3t = w3.T                             # (F2, F1)

        h1, st1 = conv1(x, w1t)
        sc1, sh1 = _finalize_bn(st1, g1, be1, M)
        h2, st2 = conv2(h1, sc1, sh1, w2cf, masks)
        sc2, sh2 = _finalize_bn(st2, g2, be2, M)
        h3, st3 = conv3(h2, sc2, sh2, w3t)
        sc3, sh3 = _finalize_bn(st3, g3, be3, M)
        if use_cn:
            y = out_call(h3, sc3, sh3, x, wsk.T, bsk.reshape(F2, 1))
        else:
            y = out_call(h3, sc3, sh3, x)
        return y.reshape(N, F2, H, W)

    return jax.jit(forward)


# ------------------------- pure-JAX reference (NCHW in / NCHW out) ------------------------
def ref_identity_block(x_nchw, params, filters, matmul_dtype=jnp.float32):
    """Training-mode BN semantics; matmul_dtype=bfloat16 matches the kernel's MXU precision."""
    C = x_nchw.shape[1]
    F0, F1, F2 = filters
    (w1, b1, g1, be1, w2, b2, g2, be2, w3, b3, g3, be3, wsk, bsk) = params
    md = matmul_dtype
    x = jnp.transpose(x_nchw, (0, 2, 3, 1))

    def bn(h, g, b):
        m = jnp.mean(h, axis=(0, 1, 2), keepdims=True)
        v = jnp.mean(jnp.square(h - m), axis=(0, 1, 2), keepdims=True)
        return g.reshape(1, 1, 1, -1) * (h - m) * jax.lax.rsqrt(v + BN_EPS) \
            + b.reshape(1, 1, 1, -1)

    h = jnp.einsum('nhwc,cf->nhwf', x.astype(md), w1.astype(md),
                   preferred_element_type=jnp.float32) + b1.reshape(1, 1, 1, -1)
    h = jax.nn.relu(bn(h, g1, be1))
    h = jax.lax.conv_general_dilated(
        h.astype(md), w2.reshape(3, 3, F0, F1).astype(md), (1, 1), 'SAME',
        dimension_numbers=('NHWC', 'HWIO', 'NHWC'),
        preferred_element_type=jnp.float32) + b2.reshape(1, 1, 1, -1)
    h = jax.nn.relu(bn(h, g2, be2))
    h = jnp.einsum('nhwc,cf->nhwf', h.astype(md), w3.astype(md),
                   preferred_element_type=jnp.float32) + b3.reshape(1, 1, 1, -1)
    h = bn(h, g3, be3)
    if C != F2:
        skip = jnp.einsum('nhwc,cf->nhwf', x.astype(md), wsk.astype(md),
                          preferred_element_type=jnp.float32) + bsk.reshape(1, 1, 1, -1)
    else:
        skip = x
    y = jax.nn.relu(skip + h)
    return jnp.transpose(y, (0, 3, 1, 2))


def _make_params(key, C, filters):
    F0, F1, F2 = filters
    ks = jax.random.split(key, 8)
    w1 = jax.random.normal(ks[0], (C, F0), jnp.float32) * 0.2
    b1 = jax.random.normal(ks[1], (1, F0), jnp.float32) * 0.1
    g1, be1 = jnp.ones((1, F0), jnp.float32), jnp.zeros((1, F0), jnp.float32)
    w2 = jax.random.normal(ks[2], (9, F0, F1), jnp.float32) * 0.2   # flattened HWIO
    b2 = jax.random.normal(ks[3], (1, F1), jnp.float32) * 0.1
    g2, be2 = jnp.ones((1, F1), jnp.float32), jnp.zeros((1, F1), jnp.float32)
    w3 = jax.random.normal(ks[4], (F1, F2), jnp.float32) * 0.2
    b3 = jax.random.normal(ks[5], (1, F2), jnp.float32) * 0.1
    g3, be3 = jnp.ones((1, F2), jnp.float32), jnp.zeros((1, F2), jnp.float32)
    wsk = jax.random.normal(ks[6], (C, F2), jnp.float32) * 0.2
    bsk = jax.random.normal(ks[7], (1, F2), jnp.float32) * 0.1
    return (w1, b1, g1, be1, w2, b2, g2, be2, w3, b3, g3, be3, wsk, bsk)


if __name__ == "__main__":
    key = jax.random.PRNGKey(0)
    k1, k2, k3, k4 = jax.random.split(key, 4)

    # --- config 1: channels != filters[2] -> channel_net (1x1 projection) skip --------
    N, C, H, W = 2, 4, 16, 16
    filters = (8, 8, 16)
    params = _make_params(k1, C, filters)
    x = jax.random.normal(k2, (N, C, H, W), jnp.float32)

    fwd = make_identity_block(N, C, H, W, filters)
    y = fwd(x, params)
    jax.block_until_ready(y)
    assert y.shape == (N, filters[2], H, W), y.shape

    y_ref = ref_identity_block(x, params, filters, matmul_dtype=jnp.bfloat16)
    err = float(jnp.max(jnp.abs(y - y_ref)))
    assert err < 3e-2, f"channel_net path: max abs err vs matched-precision ref {err}"
    # loose sanity bound vs full-f32 reference (kernel uses bf16 MXU inputs)
    y_f32 = ref_identity_block(x, params, filters, matmul_dtype=jnp.float32)
    err32 = float(jnp.max(jnp.abs(y - y_f32)))
    assert err32 < 0.35, f"channel_net path: max abs err vs f32 ref {err32}"

    # --- config 2: channels == filters[2] -> identity skip ----------------------------
    C2 = 16
    params2 = _make_params(k3, C2, filters)
    x2 = jax.random.normal(k4, (N, C2, H, W), jnp.float32)

    fwd2 = make_identity_block(N, C2, H, W, filters)
    y2 = fwd2(x2, params2)
    jax.block_until_ready(y2)
    assert y2.shape == (N, filters[2], H, W), y2.shape

    y2_ref = ref_identity_block(x2, params2, filters, matmul_dtype=jnp.bfloat16)
    err2 = float(jnp.max(jnp.abs(y2 - y2_ref)))
    assert err2 < 3e-2, f"identity path: max abs err vs matched-precision ref {err2}"

    print("KERNEL_OK")
</pallas_src>

<mosaic_0001>
module attributes {stable_mosaic.version = 11 : i64} {
  func.func @conv1_kernel(%arg0: i32, %arg1: i32, %arg2: memref<1x4x256xf32, #tpu.memory_space<vmem>>, %arg3: memref<8x4xf32, #tpu.memory_space<vmem>>, %arg4: memref<1x8x256xf32, #tpu.memory_space<vmem>>, %arg5: memref<1x8x2xf32, #tpu.memory_space<vmem>>) attributes {dimension_semantics = [#tpu.dimension_semantics<parallel>, #tpu.dimension_semantics<parallel>], iteration_bounds = array<i64: 2, 1>, scalar_prefetch = 0 : i64, scratch_operands = 0 : i64, tpu.core_type = #tpu.core_type<tc>, window_params = [{transform_indices = @transform_0, window_bounds = array<i64: 1, 4, 256>}, {pipeline_mode = #tpu.pipeline_mode<synchronous>, transform_indices = @transform_1, window_bounds = array<i64: 8, 4>}, {transform_indices = @transform_2, window_bounds = array<i64: 1, 8, 256>}, {transform_indices = @transform_3, window_bounds = array<i64: 1, 8, 2>}]} {
    %c0 = arith.constant 0 : index
    %c0_0 = arith.constant 0 : index
    %0 = vector.load %arg3[%c0, %c0_0] : memref<8x4xf32, #tpu.memory_space<vmem>>, vector<8x4xf32>
    %1 = arith.truncf %0 : vector<8x4xf32> to vector<8x4xbf16>
    %c0_1 = arith.constant 0 : index
    %c0_2 = arith.constant 0 : index
    %c0_3 = arith.constant 0 : index
    %2 = vector.load %arg2[%c0_1, %c0_2, %c0_3] : memref<1x4x256xf32, #tpu.memory_space<vmem>>, vector<1x4x256xf32>
    %3 = vector.shape_cast %2 : vector<1x4x256xf32> to vector<4x256xf32>
    %4 = arith.truncf %3 : vector<4x256xf32> to vector<4x256xbf16>
    %cst = arith.constant dense<0.000000e+00> : vector<8x256xf32>
    %5 = tpu.matmul %1, %4, %cst {dimension_numbers = #tpu.dot_dimension_numbers<[1], [0], [0], [1], [0, 0, 1, 1], [], []>} : vector<8x4xbf16>, vector<4x256xbf16>, vector<8x256xf32> -> vector<8x256xf32>
    %c0_4 = arith.constant 0 : index
    %c0_5 = arith.constant 0 : index
    %c0_6 = arith.constant 0 : index
    %6 = vector.load %arg4[%c0_4, %c0_5, %c0_6] : memref<1x8x256xf32, #tpu.memory_space<vmem>>, vector<1x8x256xf32>
    %7 = vector.shape_cast %6 : vector<1x8x256xf32> to vector<8x256xf32>
    %8 = vector.shape_cast %5 : vector<8x256xf32> to vector<1x8x256xf32>
    tpu.vector_store %arg4[%c0_4, %c0_5, %c0_6], %8 {strides = array<i32>} : memref<1x8x256xf32, #tpu.memory_space<vmem>>, vector<1x8x256xf32>,
    %cst_7 = arith.constant dense<0.000000e+00> : vector<8xf32>
    %9 = vector.multi_reduction <add>, %5, %cst_7 [1] : vector<8x256xf32> to vector<8xf32>
    %10 = vector.shape_cast %9 : vector<8xf32> to vector<8x1xf32>
    %c0_8 = arith.constant 0 : index
    %c0_9 = arith.constant 0 : index
    %c0_10 = arith.constant 0 : index
    %11 = vector.load %arg5[%c0_8, %c0_9, %c0_10] : memref<1x8x2xf32, #tpu.memory_space<vmem>>, vector<1x8x1xf32>
    %12 = vector.shape_cast %11 : vector<1x8x1xf32> to vector<8x1xf32>
    %13 = vector.shape_cast %10 : vector<8x1xf32> to vector<1x8x1xf32>
    tpu.vector_store %arg5[%c0_8, %c0_9, %c0_10], %13 {strides = array<i32>} : memref<1x8x2xf32, #tpu.memory_space<vmem>>, vector<1x8x1xf32>,
    %14 = arith.mulf %5, %5 : vector<8x256xf32>
    %cst_11 = arith.constant dense<0.000000e+00> : vector<8xf32>
    %15 = vector.multi_reduction <add>, %14, %cst_11 [1] : vector<8x256xf32> to vector<8xf32>
    %16 = vector.shape_cast %15 : vector<8xf32> to vector<8x1xf32>
    %c0_12 = arith.constant 0 : index
    %c0_13 = arith.constant 0 : index
    %c1 = arith.constant 1 : index
    %17 = vector.load %arg5[%c0_12, %c0_13, %c1] : memref<1x8x2xf32, #tpu.memory_space<vmem>>, vector<1x8x1xf32>
    %18 = vector.shape_cast %17 : vector<1x8x1xf32> to vector<8x1xf32>
    %19 = vector.shape_cast %16 : vector<8x1xf32> to vector<1x8x1xf32>
    tpu.vector_store %arg5[%c0_12, %c0_13, %c1], %19 {strides = array<i32>} : memref<1x8x2xf32, #tpu.memory_space<vmem>>, vector<1x8x1xf32>,
    return
  }
  func.func @transform_0(%arg0: i32, %arg1: i32) -> (i32, i32, i32) {
    %c0_i32 = arith.constant 0 : i32
    %c0_i32_0 = arith.constant 0 : i32
    return %arg0, %c0_i32, %arg1 : i32, i32, i32
  }
  func.func @transform_1(%arg0: i32, %arg1: i32) -> (i32, i32) {
    %c0_i32 = arith.constant 0 : i32
    %c0_i32_0 = arith.constant 0 : i32
    %c0_i32_1 = arith.constant 0 : i32
    return %c0_i32, %c0_i32_0 : i32, i32
  }
  func.func @transform_2(%arg0: i32, %arg1: i32) -> (i32, i32, i32) {
    %c0_i32 = arith.constant 0 : i32
    %c0_i32_0 = arith.constant 0 : i32
    return %arg0, %c0_i32, %arg1 : i32, i32, i32
  }
  func.func @transform_3(%arg0: i32, %arg1: i32) -> (i32, i32, i32) {
    %c1_i32 = arith.constant 1 : i32
    %0 = arith.muli %arg0, %c1_i32 : i32
    %1 = arith.addi %0, %arg1 : i32
    %c0_i32 = arith.constant 0 : i32
    %c0_i32_0 = arith.constant 0 : i32
    %c0_i32_1 = arith.constant 0 : i32
    return %1, %c0_i32, %c0_i32_0 : i32, i32, i32
  }
}

module attributes {stable_mosaic.version = 11 : i64} {
  func.func @conv2_kernel(%arg0: i32, %arg1: memref<1x8x256xf32, #tpu.memory_space<vmem>>, %arg2: memref<8x1xf32, #tpu.memory_space<vmem>>, %arg3: memref<8x1xf32, #tpu.memory_space<vmem>>, %arg4: memref<8x72xf32, #tpu.memory_space<vmem>>, %arg5: memref<9x256xf32, #tpu.memory_space<vmem>>, %arg6: memref<1x8x256xf32, #tpu.memory_space<vmem>>, %arg7: memref<1x8x2xf32, #tpu.memory_space<vmem>>) attributes {dimension_semantics = [#tpu.dimension_semantics<parallel>], iteration_bounds = array<i64: 2>, scalar_prefetch = 0 : i64, scratch_operands = 0 : i64, tpu.core_type = #tpu.core_type<tc>, window_params = [{transform_indices = @transform_0, window_bounds = array<i64: 1, 8, 256>}, {pipeline_mode = #tpu.pipeline_mode<synchronous>, transform_indices = @transform_1, window_bounds = array<i64: 8, 1>}, {pipeline_mode = #tpu.pipeline_mode<synchronous>, transform_indices = @transform_2, window_bounds = array<i64: 8, 1>}, {pipeline_mode = #tpu.pipeline_mode<synchronous>, transform_indices = @transform_3, window_bounds = array<i64: 8, 72>}, {pipeline_mode = #tpu.pipeline_mode<synchronous>, transform_indices = @transform_4, window_bounds = array<i64: 9, 256>}, {transform_indices = @transform_5, window_bounds = array<i64: 1, 8, 256>}, {transform_indices = @transform_6, window_bounds = array<i64: 1, 8, 2>}]} {
    %c0 = arith.constant 0 : index
    %c0_0 = arith.constant 0 : index
    %c0_1 = arith.constant 0 : index
    %0 = vector.load %arg1[%c0, %c0_0, %c0_1] : memref<1x8x256xf32, #tpu.memory_space<vmem>>, vector<1x8x256xf32>
    %1 = vector.shape_cast %0 : vector<1x8x256xf32> to vector<8x256xf32>
    %c0_2 = arith.constant 0 : index
    %c0_3 = arith.constant 0 : index
    %2 = vector.load %arg2[%c0_2, %c0_3] : memref<8x1xf32, #tpu.memory_space<vmem>>, vector<8x1xf32>
    %3 = vector.broadcast %2 : vector<8x1xf32> to vector<8x256xf32>
    %4 = arith.mulf %1, %3 : vector<8x256xf32>
    %c0_4 = arith.constant 0 : index
    %c0_5 = arith.constant 0 : index
    %5 = vector.load %arg3[%c0_4, %c0_5] : memref<8x1xf32, #tpu.memory_space<vmem>>, vector<8x1xf32>
    %6 = vector.broadcast %5 : vector<8x1xf32> to vector<8x256xf32>
    %7 = arith.addf %4, %6 : vector<8x256xf32>
    %cst = arith.constant 0.000000e+00 : f32
    %8 = vector.broadcast %cst : f32 to vector<8x256xf32>
    %9 = arith.maximumf %7, %8 : vector<8x256xf32>
    %c17_i32 = arith.constant 17 : i32
    %10 = tpu.dynamic_rotate %9 by %c17_i32 dim 1 : vector<8x256xf32>, i32 -> vector<8x256xf32>
    %c0_6 = arith.constant 0 : index
    %c0_7 = arith.constant 0 : index
    %11 = vector.load %arg5[%c0_6, %c0_7] : memref<9x256xf32, #tpu.memory_space<vmem>>, vector<1x256xf32>
    %12 = vector.broadcast %11 : vector<1x256xf32> to vector<8x256xf32>
    %13 = arith.mulf %10, %12 : vector<8x256xf32>
    %c16_i32 = arith.constant 16 : i32
    %14 = tpu.dynamic_rotate %9 by %c16_i32 dim 1 : vector<8x256xf32>, i32 -> vector<8x256xf32>
    %c1 = arith.constant 1 : index
    %c0_8 = arith.constant 0 : index
    %15 = vector.load %arg5[%c1, %c0_8] : memref<9x256xf32, #tpu.memory_space<vmem>>, vector<1x256xf32>
    %16 = vector.broadcast %15 : vector<1x256xf32> to vector<8x256xf32>
    %17 = arith.mulf %14, %16 : vector<8x256xf32>
    %c15_i32 = arith.constant 15 : i32
    %18 = tpu.dynamic_rotate %9 by %c15_i32 dim 1 : vector<8x256xf32>, i32 -> vector<8x256xf32>
    %c2 = arith.constant 2 : index
    %c0_9 = arith.constant 0 : index
    %19 = vector.load %arg5[%c2, %c0_9] : memref<9x256xf32, #tpu.memory_space<vmem>>, vector<1x256xf32>
    %20 = vector.broadcast %19 : vector<1x256xf32> to vector<8x256xf32>
    %21 = arith.mulf %18, %20 : vector<8x256xf32>
    %c1_i32 = arith.constant 1 : i32
    %22 = tpu.dynamic_rotate %9 by %c1_i32 dim 1 : vector<8x256xf32>, i32 -> vector<8x256xf32>
    %c3 = arith.constant 3 : index
    %c0_10 = arith.constant 0 : index
    %23 = vector.load %arg5[%c3, %c0_10] : memref<9x256xf32, #tpu.memory_space<vmem>>, vector<1x256xf32>
    %24 = vector.broadcast %23 : vector<1x256xf32> to vector<8x256xf32>
    %25 = arith.mulf %22, %24 : vector<8x256xf32>
    %c4 = arith.constant 4 : index
    %c0_11 = arith.constant 0 : index
    %26 = vector.load %arg5[%c4, %c0_11] : memref<9x256xf32, #tpu.memory_space<vmem>>, vector<1x256xf32>
    %27 = vector.broadcast %26 : vector<1x256xf32> to vector<8x256xf32>
    %28 = arith.mulf %9, %27 : vector<8x256xf32>
    %c255_i32 = arith.constant 255 : i32
    %29 = tpu.dynamic_rotate %9 by %c255_i32 dim 1 : vector<8x256xf32>, i32 -> vector<8x256xf32>
    %c5 = arith.constant 5 : index
    %c0_12 = arith.constant 0 : index
    %30 = vector.load %arg5[%c5, %c0_12] : memref<9x256xf32, #tpu.memory_space<vmem>>, vector<1x256xf32>
    %31 = vector.broadcast %30 : vector<1x256xf32> to vector<8x256xf32>
    %32 = arith.mulf %29, %31 : vector<8x256xf32>
    %c241_i32 = arith.constant 241 : i32
    %33 = tpu.dynamic_rotate %9 by %c241_i32 dim 1 : vector<8x256xf32>, i32 -> vector<8x256xf32>
    %c6 = arith.constant 6 : index
    %c0_13 = arith.constant 0 : index
    %34 = vector.load %arg5[%c6, %c0_13] : memref<9x256xf32, #tpu.memory_space<vmem>>, vector<1x256xf32>
    %35 = vector.broadcast %34 : vector<1x256xf32> to vector<8x256xf32>
    %36 = arith.mulf %33, %35 : vector<8x256xf32>
    %c240_i32 = arith.constant 240 : i32
    %37 = tpu.dynamic_rotate %9 by %c240_i32 dim 1 : vector<8x256xf32>, i32 -> vector<8x256xf32>
    %c7 = arith.constant 7 : index
    %c0_14 = arith.constant 0 : index
    %38 = vector.load %arg5[%c7, %c0_14] : memref<9x256xf32, #tpu.memory_space<vmem>>, vector<1x256xf32>
    %39 = vector.broadcast %38 : vector<1x256xf32> to vector<8x256xf32>
    %40 = arith.mulf %37, %39 : vector<8x256xf32>
    %c239_i32 = arith.constant 239 : i32
    %41 = tpu.dynamic_rotate %9 by %c239_i32 dim 1 : vector<8x256xf32>, i32 -> vector<8x256xf32>
    %c8 = arith.constant 8 : index
    %c0_15 = arith.constant 0 : index
    %42 = vector.load %arg5[%c8, %c0_15] : memref<9x256xf32, #tpu.memory_space<vmem>>, vector<1x256xf32>
    %43 = vector.broadcast %42 : vector<1x256xf32> to vector<8x256xf32>
    %44 = arith.mulf %41, %43 : vector<8x256xf32>
    %45 = tpu.concatenate %13, %17, %21, %25, %28, %32, %36, %40, %44 in 0 : vector<8x256xf32>, vector<8x256xf32>, vector<8x256xf32>, vector<8x256xf32>, vector<8x256xf32>, vector<8x256xf32>, vector<8x256xf32>, vector<8x256xf32>, vector<8x256xf32> -> vector<72x256xf32>
    %46 = arith.truncf %45 : vector<72x256xf32> to vector<72x256xbf16>
    %c0_16 = arith.constant 0 : index
    %c0_17 = arith.constant 0 : index
    %47 = vector.load %arg4[%c0_16, %c0_17] : memref<8x72xf32, #tpu.memory_space<vmem>>, vector<8x72xf32>
    %48 = arith.truncf %47 : vector<8x72xf32> to vector<8x72xbf16>
    %cst_18 = arith.constant dense<0.000000e+00> : vector<8x256xf32>
    %49 = tpu.matmul %48, %46, %cst_18 {dimension_numbers = #tpu.dot_dimension_numbers<[1], [0], [0], [1], [0, 0, 1, 1], [], []>} : vector<8x72xbf16>, vector<72x256xbf16>, vector<8x256xf32> -> vector<8x256xf32>
    %c0_19 = arith.constant 0 : index
    %c0_20 = arith.constant 0 : index
    %c0_21 = arith.constant 0 : index
    %50 = vector.load %arg6[%c0_19, %c0_20, %c0_21] : memref<1x8x256xf32, #tpu.memory_space<vmem>>, vector<1x8x256xf32>
    %51 = vector.shape_cast %50 : vector<1x8x256xf32> to vector<8x256xf32>
    %52 = vector.shape_cast %49 : vector<8x256xf32> to vector<1x8x256xf32>
    tpu.vector_store %arg6[%c0_19, %c0_20, %c0_21], %52 {strides = array<i32>} : memref<1x8x256xf32, #tpu.memory_space<vmem>>, vector<1x8x256xf32>,
    %cst_22 = arith.constant dense<0.000000e+00> : vector<8xf32>
    %53 = vector.multi_reduction <add>, %49, %cst_22 [1] : vector<8x256xf32> to vector<8xf32>
    %54 = vector.shape_cast %53 : vector<8xf32> to vector<8x1xf32>
    %c0_23 = arith.constant 0 : index
    %c0_24 = arith.constant 0 : index
    %c0_25 = arith.constant 0 : index
    %55 = vector.load %arg7[%c0_23, %c0_24, %c0_25] : memref<1x8x2xf32, #tpu.memory_space<vmem>>, vector<1x8x1xf32>
    %56 = vector.shape_cast %55 : vector<1x8x1xf32> to vector<8x1xf32>
    %57 = vector.shape_cast %54 : vector<8x1xf32> to vector<1x8x1xf32>
    tpu.vector_store %arg7[%c0_23, %c0_24, %c0_25], %57 {strides = array<i32>} : memref<1x8x2xf32, #tpu.memory_space<vmem>>, vector<1x8x1xf32>,
    %58 = arith.mulf %49, %49 : vector<8x256xf32>
    %cst_26 = arith.constant dense<0.000000e+00> : vector<8xf32>
    %59 = vector.multi_reduction <add>, %58, %cst_26 [1] : vector<8x256xf32> to vector<8xf32>
    %60 = vector.shape_cast %59 : vector<8xf32> to vector<8x1xf32>
    %c0_27 = arith.constant 0 : index
    %c0_28 = arith.constant 0 : index
    %c1_29 = arith.constant 1 : index
    %61 = vector.load %arg7[%c0_27, %c0_28, %c1_29] : memref<1x8x2xf32, #tpu.memory_space<vmem>>, vector<1x8x1xf32>
    %62 = vector.shape_cast %61 : vector<1x8x1xf32> to vector<8x1xf32>
    %63 = vector.shape_cast %60 : vector<8x1xf32> to vector<1x8x1xf32>
    tpu.vector_store %arg7[%c0_27, %c0_28, %c1_29], %63 {strides = array<i32>} : memref<1x8x2xf32, #tpu.memory_space<vmem>>, vector<1x8x1xf32>,
    return
  }
  func.func @transform_0(%arg0: i32) -> (i32, i32, i32) {
    %c0_i32 = arith.constant 0 : i32
    %c0_i32_0 = arith.constant 0 : i32
    %c0_i32_1 = arith.constant 0 : i32
    return %arg0, %c0_i32, %c0_i32_0 : i32, i32, i32
  }
  func.func @transform_1(%arg0: i32) -> (i32, i32) {
    %c0_i32 = arith.constant 0 : i32
    %c0_i32_0 = arith.constant 0 : i32
    %c0_i32_1 = arith.constant 0 : i32
    return %c0_i32, %c0_i32_0 : i32, i32
  }
  func.func @transform_2(%arg0: i32) -> (i32, i32) {
    %c0_i32 = arith.constant 0 : i32
    %c0_i32_0 = arith.constant 0 : i32
    %c0_i32_1 = arith.constant 0 : i32
    return %c0_i32, %c0_i32_0 : i32, i32
  }
  func.func @transform_3(%arg0: i32) -> (i32, i32) {
    %c0_i32 = arith.constant 0 : i32
    %c0_i32_0 = arith.constant 0 : i32
    %c0_i32_1 = arith.constant 0 : i32
    return %c0_i32, %c0_i32_0 : i32, i32
  }
  func.func @transform_4(%arg0: i32) -> (i32, i32) {
    %c0_i32 = arith.constant 0 : i32
    %c0_i32_0 = arith.constant 0 : i32
    %c0_i32_1 = arith.constant 0 : i32
    return %c0_i32, %c0_i32_0 : i32, i32
  }
  func.func @transform_5(%arg0: i32) -> (i32, i32, i32) {
    %c0_i32 = arith.constant 0 : i32
    %c0_i32_0 = arith.constant 0 : i32
    %c0_i32_1 = arith.constant 0 : i32
    return %arg0, %c0_i32, %c0_i32_0 : i32, i32, i32
  }
  func.func @transform_6(%arg0: i32) -> (i32, i32, i32) {
    %c0_i32 = arith.constant 0 : i32
    %c0_i32_0 = arith.constant 0 : i32
    %c0_i32_1 = arith.constant 0 : i32
    return %arg0, %c0_i32, %c0_i32_0 : i32, i32, i32
  }
}

module attributes {stable_mosaic.version = 11 : i64} {
  func.func @conv3_kernel(%arg0: i32, %arg1: i32, %arg2: memref<1x8x256xf32, #tpu.memory_space<vmem>>, %arg3: memref<8x1xf32, #tpu.memory_space<vmem>>, %arg4: memref<8x1xf32, #tpu.memory_space<vmem>>, %arg5: memref<16x8xf32, #tpu.memory_space<vmem>>, %arg6: memref<1x16x256xf32, #tpu.memory_space<vmem>>, %arg7: memref<1x16x2xf32, #tpu.memory_space<vmem>>) attributes {dimension_semantics = [#tpu.dimension_semantics<parallel>, #tpu.dimension_semantics<parallel>], iteration_bounds = array<i64: 2, 1>, scalar_prefetch = 0 : i64, scratch_operands = 0 : i64, tpu.core_type = #tpu.core_type<tc>, window_params = [{transform_indices = @transform_0, window_bounds = array<i64: 1, 8, 256>}, {pipeline_mode = #tpu.pipeline_mode<synchronous>, transform_indices = @transform_1, window_bounds = array<i64: 8, 1>}, {pipeline_mode = #tpu.pipeline_mode<synchronous>, transform_indices = @transform_2, window_bounds = array<i64: 8, 1>}, {pipeline_mode = #tpu.pipeline_mode<synchronous>, transform_indices = @transform_3, window_bounds = array<i64: 16, 8>}, {transform_indices = @transform_4, window_bounds = array<i64: 1, 16, 256>}, {transform_indices = @transform_5, window_bounds = array<i64: 1, 16, 2>}]} {
    %c0 = arith.constant 0 : index
    %c0_0 = arith.constant 0 : index
    %c0_1 = arith.constant 0 : index
    %0 = vector.load %arg2[%c0, %c0_0, %c0_1] : memref<1x8x256xf32, #tpu.memory_space<vmem>>, vector<1x8x256xf32>
    %1 = vector.shape_cast %0 : vector<1x8x256xf32> to vector<8x256xf32>
    %c0_2 = arith.constant 0 : index
    %c0_3 = arith.constant 0 : index
    %2 = vector.load %arg3[%c0_2, %c0_3] : memref<8x1xf32, #tpu.memory_space<vmem>>, vector<8x1xf32>
    %3 = vector.broadcast %2 : vector<8x1xf32> to vector<8x256xf32>
    %4 = arith.mulf %1, %3 : vector<8x256xf32>
    %c0_4 = arith.constant 0 : index
    %c0_5 = arith.constant 0 : index
    %5 = vector.load %arg4[%c0_4, %c0_5] : memref<8x1xf32, #tpu.memory_space<vmem>>, vector<8x1xf32>
    %6 = vector.broadcast %5 : vector<8x1xf32> to vector<8x256xf32>
    %7 = arith.addf %4, %6 : vector<8x256xf32>
    %cst = arith.constant 0.000000e+00 : f32
    %8 = vector.broadcast %cst : f32 to vector<8x256xf32>
    %9 = arith.maximumf %7, %8 : vector<8x256xf32>
    %c0_6 = arith.constant 0 : index
    %c0_7 = arith.constant 0 : index
    %10 = vector.load %arg5[%c0_6, %c0_7] : memref<16x8xf32, #tpu.memory_space<vmem>>, vector<16x8xf32>
    %11 = arith.truncf %10 : vector<16x8xf32> to vector<16x8xbf16>
    %12 = arith.truncf %9 : vector<8x256xf32> to vector<8x256xbf16>
    %cst_8 = arith.constant dense<0.000000e+00> : vector<16x256xf32>
    %13 = tpu.matmul %11, %12, %cst_8 {dimension_numbers = #tpu.dot_dimension_numbers<[1], [0], [0], [1], [0, 0, 1, 1], [], []>} : vector<16x8xbf16>, vector<8x256xbf16>, vector<16x256xf32> -> vector<16x256xf32>
    %c0_9 = arith.constant 0 : index
    %c0_10 = arith.constant 0 : index
    %c0_11 = arith.constant 0 : index
    %14 = vector.load %arg6[%c0_9, %c0_10, %c0_11] : memref<1x16x256xf32, #tpu.memory_space<vmem>>, vector<1x16x256xf32>
    %15 = vector.shape_cast %14 : vector<1x16x256xf32> to vector<16x256xf32>
    %16 = vector.shape_cast %13 : vector<16x256xf32> to vector<1x16x256xf32>
    tpu.vector_store %arg6[%c0_9, %c0_10, %c0_11], %16 {strides = array<i32>} : memref<1x16x256xf32, #tpu.memory_space<vmem>>, vector<1x16x256xf32>,
    %cst_12 = arith.constant dense<0.000000e+00> : vector<16xf32>
    %17 = vector.multi_reduction <add>, %13, %cst_12 [1] : vector<16x256xf32> to vector<16xf32>
    %18 = vector.shape_cast %17 : vector<16xf32> to vector<16x1xf32>
    %c0_13 = arith.constant 0 : index
    %c0_14 = arith.constant 0 : index
    %c0_15 = arith.constant 0 : index
    %19 = vector.load %arg7[%c0_13, %c0_14, %c0_15] : memref<1x16x2xf32, #tpu.memory_space<vmem>>, vector<1x16x1xf32>
    %20 = vector.shape_cast %19 : vector<1x16x1xf32> to vector<16x1xf32>
    %21 = vector.shape_cast %18 : vector<16x1xf32> to vector<1x16x1xf32>
    tpu.vector_store %arg7[%c0_13, %c0_14, %c0_15], %21 {strides = array<i32>} : memref<1x16x2xf32, #tpu.memory_space<vmem>>, vector<1x16x1xf32>,
    %22 = arith.mulf %13, %13 : vector<16x256xf32>
    %cst_16 = arith.constant dense<0.000000e+00> : vector<16xf32>
    %23 = vector.multi_reduction <add>, %22, %cst_16 [1] : vector<16x256xf32> to vector<16xf32>
    %24 = vector.shape_cast %23 : vector<16xf32> to vector<16x1xf32>
    %c0_17 = arith.constant 0 : index
    %c0_18 = arith.constant 0 : index
    %c1 = arith.constant 1 : index
    %25 = vector.load %arg7[%c0_17, %c0_18, %c1] : memref<1x16x2xf32, #tpu.memory_space<vmem>>, vector<1x16x1xf32>
    %26 = vector.shape_cast %25 : vector<1x16x1xf32> to vector<16x1xf32>
    %27 = vector.shape_cast %24 : vector<16x1xf32> to vector<1x16x1xf32>
    tpu.vector_store %arg7[%c0_17, %c0_18, %c1], %27 {strides = array<i32>} : memref<1x16x2xf32, #tpu.memory_space<vmem>>, vector<1x16x1xf32>,
    return
  }
  func.func @transform_0(%arg0: i32, %arg1: i32) -> (i32, i32, i32) {
    %c0_i32 = arith.constant 0 : i32
    %c0_i32_0 = arith.constant 0 : i32
    return %arg0, %c0_i32, %arg1 : i32, i32, i32
  }
  func.func @transform_1(%arg0: i32, %arg1: i32) -> (i32, i32) {
    %c0_i32 = arith.constant 0 : i32
    %c0_i32_0 = arith.constant 0 : i32
    %c0_i32_1 = arith.constant 0 : i32
    return %c0_i32, %c0_i32_0 : i32, i32
  }
  func.func @transform_2(%arg0: i32, %arg1: i32) -> (i32, i32) {
    %c0_i32 = arith.constant 0 : i32
    %c0_i32_0 = arith.constant 0 : i32
    %c0_i32_1 = arith.constant 0 : i32
    return %c0_i32, %c0_i32_0 : i32, i32
  }
  func.func @transform_3(%arg0: i32, %arg1: i32) -> (i32, i32) {
    %c0_i32 = arith.constant 0 : i32
    %c0_i32_0 = arith.constant 0 : i32
    %c0_i32_1 = arith.constant 0 : i32
    return %c0_i32, %c0_i32_0 : i32, i32
  }
  func.func @transform_4(%arg0: i32, %arg1: i32) -> (i32, i32, i32) {
    %c0_i32 = arith.constant 0 : i32
    %c0_i32_0 = arith.constant 0 : i32
    return %arg0, %c0_i32, %arg1 : i32, i32, i32
  }
  func.func @transform_5(%arg0: i32, %arg1: i32) -> (i32, i32, i32) {
    %c1_i32 = arith.constant 1 : i32
    %0 = arith.muli %arg0, %c1_i32 : i32
    %1 = arith.addi %0, %arg1 : i32
    %c0_i32 = arith.constant 0 : i32
    %c0_i32_0 = arith.constant 0 : i32
    %c0_i32_1 = arith.constant 0 : i32
    return %1, %c0_i32, %c0_i32_0 : i32, i32, i32
  }
}

module attributes {stable_mosaic.version = 11 : i64} {
  func.func @out_kernel(%arg0: i32, %arg1: i32, %arg2: memref<1x16x256xf32, #tpu.memory_space<vmem>>, %arg3: memref<16x1xf32, #tpu.memory_space<vmem>>, %arg4: memref<16x1xf32, #tpu.memory_space<vmem>>, %arg5: memref<1x4x256xf32, #tpu.memory_space<vmem>>, %arg6: memref<16x4xf32, #tpu.memory_space<vmem>>, %arg7: memref<16x1xf32, #tpu.memory_space<vmem>>, %arg8: memref<1x16x256xf32, #tpu.memory_space<vmem>>) attributes {dimension_semantics = [#tpu.dimension_semantics<parallel>, #tpu.dimension_semantics<parallel>], iteration_bounds = array<i64: 2, 1>, scalar_prefetch = 0 : i64, scratch_operands = 0 : i64, tpu.core_type = #tpu.core_type<tc>, window_params = [{transform_indices = @transform_0, window_bounds = array<i64: 1, 16, 256>}, {pipeline_mode = #tpu.pipeline_mode<synchronous>, transform_indices = @transform_1, window_bounds = array<i64: 16, 1>}, {pipeline_mode = #tpu.pipeline_mode<synchronous>, transform_indices = @transform_2, window_bounds = array<i64: 16, 1>}, {transform_indices = @transform_3, window_bounds = array<i64: 1, 4, 256>}, {pipeline_mode = #tpu.pipeline_mode<synchronous>, transform_indices = @transform_4, window_bounds = array<i64: 16, 4>}, {pipeline_mode = #tpu.pipeline_mode<synchronous>, transform_indices = @transform_5, window_bounds = array<i64: 16, 1>}, {transform_indices = @transform_6, window_bounds = array<i64: 1, 16, 256>}]} {
    %c0 = arith.constant 0 : index
    %c0_0 = arith.constant 0 : index
    %c0_1 = arith.constant 0 : index
    %0 = vector.load %arg2[%c0, %c0_0, %c0_1] : memref<1x16x256xf32, #tpu.memory_space<vmem>>, vector<1x16x256xf32>
    %1 = vector.shape_cast %0 : vector<1x16x256xf32> to vector<16x256xf32>
    %c0_2 = arith.constant 0 : index
    %c0_3 = arith.constant 0 : index
    %2 = vector.load %arg3[%c0_2, %c0_3] : memref<16x1xf32, #tpu.memory_space<vmem>>, vector<16x1xf32>
    %3 = vector.broadcast %2 : vector<16x1xf32> to vector<16x256xf32>
    %4 = arith.mulf %1, %3 : vector<16x256xf32>
    %c0_4 = arith.constant 0 : index
    %c0_5 = arith.constant 0 : index
    %5 = vector.load %arg4[%c0_4, %c0_5] : memref<16x1xf32, #tpu.memory_space<vmem>>, vector<16x1xf32>
    %6 = vector.broadcast %5 : vector<16x1xf32> to vector<16x256xf32>
    %7 = arith.addf %4, %6 : vector<16x256xf32>
    %c0_6 = arith.constant 0 : index
    %c0_7 = arith.constant 0 : index
    %8 = vector.load %arg6[%c0_6, %c0_7] : memref<16x4xf32, #tpu.memory_space<vmem>>, vector<16x4xf32>
    %9 = arith.truncf %8 : vector<16x4xf32> to vector<16x4xbf16>
    %c0_8 = arith.constant 0 : index
    %c0_9 = arith.constant 0 : index
    %c0_10 = arith.constant 0 : index
    %10 = vector.load %arg5[%c0_8, %c0_9, %c0_10] : memref<1x4x256xf32, #tpu.memory_space<vmem>>, vector<1x4x256xf32>
    %11 = vector.shape_cast %10 : vector<1x4x256xf32> to vector<4x256xf32>
    %12 = arith.truncf %11 : vector<4x256xf32> to vector<4x256xbf16>
    %cst = arith.constant dense<0.000000e+00> : vector<16x256xf32>
    %13 = tpu.matmul %9, %12, %cst {dimension_numbers = #tpu.dot_dimension_numbers<[1], [0], [0], [1], [0, 0, 1, 1], [], []>} : vector<16x4xbf16>, vector<4x256xbf16>, vector<16x256xf32> -> vector<16x256xf32>
    %c0_11 = arith.constant 0 : index
    %c0_12 = arith.constant 0 : index
    %14 = vector.load %arg7[%c0_11, %c0_12] : memref<16x1xf32, #tpu.memory_space<vmem>>, vector<16x1xf32>
    %15 = vector.broadcast %14 : vector<16x1xf32> to vector<16x256xf32>
    %16 = arith.addf %13, %15 : vector<16x256xf32>
    %17 = arith.addf %16, %7 : vector<16x256xf32>
    %cst_13 = arith.constant 0.000000e+00 : f32
    %18 = vector.broadcast %cst_13 : f32 to vector<16x256xf32>
    %19 = arith.maximumf %17, %18 : vector<16x256xf32>
    %c0_14 = arith.constant 0 : index
    %c0_15 = arith.constant 0 : index
    %c0_16 = arith.constant 0 : index
    %20 = vector.load %arg8[%c0_14, %c0_15, %c0_16] : memref<1x16x256xf32, #tpu.memory_space<vmem>>, vector<1x16x256xf32>
    %21 = vector.shape_cast %20 : vector<1x16x256xf32> to vector<16x256xf32>
    %22 = vector.shape_cast %19 : vector<16x256xf32> to vector<1x16x256xf32>
    tpu.vector_store %arg8[%c0_14, %c0_15, %c0_16], %22 {strides = array<i32>} : memref<1x16x256xf32, #tpu.memory_space<vmem>>, vector<1x16x256xf32>,
    return
  }
  func.func @transform_0(%arg0: i32, %arg1: i32) -> (i32, i32, i32) {
    %c0_i32 = arith.constant 0 : i32
    %c0_i32_0 = arith.constant 0 : i32
    return %arg0, %c0_i32, %arg1 : i32, i32, i32
  }
  func.func @transform_1(%arg0: i32, %arg1: i32) -> (i32, i32) {
    %c0_i32 = arith.constant 0 : i32
    %c0_i32_0 = arith.constant 0 : i32
    %c0_i32_1 = arith.constant 0 : i32
    return %c0_i32, %c0_i32_0 : i32, i32
  }
  func.func @transform_2(%arg0: i32, %arg1: i32) -> (i32, i32) {
    %c0_i32 = arith.constant 0 : i32
    %c0_i32_0 = arith.constant 0 : i32
    %c0_i32_1 = arith.constant 0 : i32
    return %c0_i32, %c0_i32_0 : i32, i32
  }
  func.func @transform_3(%arg0: i32, %arg1: i32) -> (i32, i32, i32) {
    %c0_i32 = arith.constant 0 : i32
    %c0_i32_0 = arith.constant 0 : i32
    return %arg0, %c0_i32, %arg1 : i32, i32, i32
  }
  func.func @transform_4(%arg0: i32, %arg1: i32) -> (i32, i32) {
    %c0_i32 = arith.constant 0 : i32
    %c0_i32_0 = arith.constant 0 : i32
    %c0_i32_1 = arith.constant 0 : i32
    return %c0_i32, %c0_i32_0 : i32, i32
  }
  func.func @transform_5(%arg0: i32, %arg1: i32) -> (i32, i32) {
    %c0_i32 = arith.constant 0 : i32
    %c0_i32_0 = arith.constant 0 : i32
    %c0_i32_1 = arith.constant 0 : i32
    return %c0_i32, %c0_i32_0 : i32, i32
  }
  func.func @transform_6(%arg0: i32, %arg1: i32) -> (i32, i32, i32) {
    %c0_i32 = arith.constant 0 : i32
    %c0_i32_0 = arith.constant 0 : i32
    return %arg0, %c0_i32, %arg1 : i32, i32, i32
  }
}

</mosaic_0001>

<bundles_post_ra>
// kernel: forward.4
= control target key start
LH: loop header
LB: loop body
LE: loop exit
PB: predicated region body
PF: predicated region fallthrough
CT: control target
= control target key end

     0   :  { %s509_s12 = smov 0   ;;  %s511_s13 = smov 0   ;;  %s552_s0 = inlined_call_operand.vmem [shape: f32[2,4,256], index: 0, kind: input, shape index: {}]   ;;  %s553_s1 = inlined_call_operand.vmem [shape: f32[8,4], index: 1, kind: input, shape index: {}]   ;;  %s554_s2 = inlined_call_operand.vmem [shape: f32[2,8,256], index: 2, kind: output, shape index: {0}]   ;;  %s555_s3 = inlined_call_operand.vmem [shape: f32[2,8,2], index: 3, kind: output, shape index: {1}]  }
   0x1   :  { %s513_s14 = smov 0  }
   0x2 LB: > { %s26_s15 = sadd.s32 1, %s482_s13  ;;  %p426_p0 = scmp.ge.s32.totalorder %s486_s14, 1  ;;  %s486_s14 = sphi %s513_s14, %s14_s14   ;;  %s482_s13 = sphi %s511_s13, %s557_s13   ;;  %s478_s12 = sphi %s509_s12, %s556_s12  }
   0x3   : > { %p28_p1 = scmp.ge.s32.totalorder %s26_s15, 2  ;;  %p163_p2 = scmp.lt.s32.totalorder %s486_s14, 3 }
   0x5   : > { %s559_s15 = smov (%p28_p1, %s26_s15), 0  ;;  %p164_p3 = pnand %p426_p0, %p163_p2 }
   0x6   : > { %p201_p4 = scmp.lt.s32.totalorder (!%p164_p3), %s478_s12, 1 }
   0x7   : > { %167 = sbr.rel (%p164_p3) target bundleno = 364 (0x16c), region = 28 }
   0xc   : > { %v488_v0 = vmov 0   ;;  %s561_s12 = smov (!%p201_p4, %s478_s12), 1  ;;  %vm239_vm0 = vcmask 1041408   ;;  %v227_v4 = vld [vmem:[%s553_s1] sm:$0xff]  ;;  %vm235_vm1 = vcmask 31744   ;;  %vm292_vm2 = vcmask 7168  }
   0xd   : > { %278 = vmatprep.mubr.bf16.mxu0 %v488_v0  ;;  %s436_s16 = sshll.u32 %s561_s12, 3  ;;  %v228_v7 = vpack.c.bf16 %v227_v4, %v227_v4  ;;  %s437_s22 = sshll.u32 %s561_s12, 4  ;;  %vm299_vm3 = vcmask 15368  }
   0xe   : > { %s208_s19 = scalar_lea.vmem %s552_s0, %s436_s16  ;;  %s218_s25 = scalar_lea.vmem %s554_s2, %s437_s22 }
   0xf   : > { %v229_v1 = vld [vmem:[%s208_s19] sm:$0xff]  ;;  %s224_s28 = scalar_lea.vmem %s555_s3, %s436_s16 }
  0x10   : > { %v231_v2 = vcombine.high %v229_v1, %v229_v1  ;;  %v233_v3 = vpack.c.bf16 %v229_v1, %v229_v1 }
  0x12   : > { %v234_v5 = vpack.c.bf16 %v231_v2, %v231_v2  ;;  %v241_v6 = vsel %vm239_vm0, %v233_v3, 0 }
  0x14   : > { %432 = vmatprep.subr.msk.bf16.mxu0 %vm239_vm0, %v234_v5 }
  0x15   : > { %261 = vmatpush1.bf16.msra.mxu0 %v241_v6 }
  0x18   : > { %433 = vmatmul.mubr.msk.bf16.vlgmr.msra.gmra.mxu0 %vm235_vm1, %v228_v7 }
  0xd8   : > { %v280_v8 = vpop.f32.mrf.mxu0 }
  0xd9   : > { %287 = vst [vmem:[%s218_s25] sm:$0xff] %v280_v8  ;;  %v294_v13 = vmul.f32 %v280_v8, %v280_v8 }
  0xda   : > { %v282_v9 = vpop.f32.mrf.mxu0 }
  0xdb   : > { %288 = vst [vmem:[%s218_s25 + $0x8] sm:$0xff] %v282_v9  ;;  %v289_v10 = vadd.f32 %v282_v9, %v280_v8  ;;  %v295_v11 = vmul.f32 %v282_v9, %v282_v9 }
  0xdc   : > { %v284_v12 = vpop.f32.mrf.mxu0 }
  0xdd   : > { %290 = vadd.xlane.f32.xlu0 %v289_v10  ;;  %v296_v15 = vadd.f32 %v295_v11, %v294_v13 }
  0xde   : > { %v285_v14 = vpop.f32.mrf.mxu0 }
  0xe1   : > { %297 = vadd.xlane.f32.xlu0 %v296_v15 }
 0x166   : > { %v291_v16 = vpop.xlane.xlu0 %290 }
 0x167   : > { %293 = vst.msk [vmem:[%s224_s28] sm:$0xff] %vm292_vm2, %v291_v16 }
 0x16a   : > { %v298_v17 = vpop.xlane.xlu0 %297 }
 0x16b   : > { %300 = vst.msk [vmem:[%s224_s28] sm:$0xff] %vm299_vm3, %v298_v17 }
 0x16c PF: > { %s14_s14 = sadd.s32 1, %s486_s14   ;;  %s556_s12 = smov %s482_s13 }
 0x16d   : > { %p11_p5 = scmp.ge.s32.totalorder %s14_s14, 4   ;;  %s557_s13 = smov %s559_s15 }
 0x16f   :  { %13 = sbr.rel (!%p11_p5) target bundleno = 2 (0x2), region = 70 }

// kernel: forward.6
= control target key start
LH: loop header
LB: loop body
LE: loop exit
PB: predicated region body
PF: predicated region fallthrough
CT: control target
= control target key end

     0   :  { %s610_s18 = smov 0   ;;  %s612_s19 = smov 0   ;;  %s666_s0 = inlined_call_operand.vmem [shape: f32[2,8,256], index: 0, kind: input, shape index: {}]   ;;  %s667_s1 = inlined_call_operand.vmem [shape: f32[8,1], index: 1, kind: input, shape index: {}]   ;;  %s668_s2 = inlined_call_operand.vmem [shape: f32[8,1], index: 2, kind: input, shape index: {}]   ;;  %s669_s3 = inlined_call_operand.vmem [shape: f32[16,8], index: 3, kind: input, shape index: {}]   ;;  %s670_s4 = inlined_call_operand.vmem [shape: f32[2,16,256], index: 4, kind: output, shape index: {0}]   ;;  %s671_s5 = inlined_call_operand.vmem [shape: f32[2,16,2], index: 5, kind: output, shape index: {1}]  }
   0x1   :  { %s614_s20 = smov 0  }
   0x2 LB: > { %s28_s21 = sadd.s32 1, %s573_s19  ;;  %p515_p0 = scmp.ge.s32.totalorder %s577_s20, 1  ;;  %s577_s20 = sphi %s614_s20, %s16_s20   ;;  %s573_s19 = sphi %s612_s19, %s673_s19   ;;  %s569_s18 = sphi %s610_s18, %s672_s18  }
   0x3   : > { %p30_p1 = scmp.ge.s32.totalorder %s28_s21, 2  ;;  %p213_p2 = scmp.lt.s32.totalorder %s577_s20, 3 }
   0x5   : > { %s675_s21 = smov (%p30_p1, %s28_s21), 0  ;;  %p214_p3 = pnand %p515_p0, %p213_p2 }
   0x6   : > { %p256_p4 = scmp.lt.s32.totalorder (!%p214_p3), %s569_s18, 1 }
   0x7   : > { %217 = sbr.rel (%p214_p3) target bundleno = 496 (0x1f0), region = 36 }
   0xc   : > { %v285_v0 = vld [vmem:[%s667_s1] sm:$0xff]  ;;  %v579_v1 = vmov 0   ;;  %s677_s18 = smov (!%p256_p4, %s569_s18), 1  ;;  %vm312_vm0 = vcmask 1043456   ;;  %v304_v14 = vld [vmem:[%s669_s3 + $0x8] sm:$0xff]  ;;  %vm308_vm1 = vcmask 64512  }
   0xd   : > { %554 = vset.pattern.permute.xlu0 %v579_v1  ;;  %351 = vmatprep.mubr.bf16.mxu0 %v579_v1  ;;  %v293_v2 = vld [vmem:[%s668_s2] sm:$0xff]  ;;  %s526_s26 = sshll.u32 %s677_s18, 4  ;;  %s527_s9 = sshll.u32 %s677_s18, 5  ;;  %vm372_vm2 = vcmask 7168   ;;  %vm385_vm3 = vcmask 15368  }
   0xe   : > { %288 = vperm.xlu0 %554, %v285_v0   ;;  %s263_s29 = scalar_lea.vmem %s666_s0, %s526_s26  ;;  %v303_v13 = vld [vmem:[%s669_s3] sm:$0xff]  ;;  %s273_s12 = scalar_lea.vmem %s670_s4, %s527_s9 }
   0xf   : > { %v283_v4 = vld [vmem:[%s263_s29] sm:$0xff]  ;;  %v284_v5 = vld [vmem:[%s263_s29 + $0x8] sm:$0xff]  ;;  %v305_v18 = vpack.c.bf16 %v304_v14, %v303_v13  ;;  %s280_s15 = scalar_lea.vmem %s671_s5, %s526_s26 }
  0x12   : > { %296 = vperm.xlu0 %554, %v293_v2  }
  0x89   : > { %v289_v3 = vpop.permute.xlu0 %288 }
  0x8a   : > { %v291_v6 = vmul.f32 %v289_v3, %v283_v4  ;;  %v292_v7 = vmul.f32 %v289_v3, %v284_v5 }
  0x8d   : > { %v297_v8 = vpop.permute.xlu0 %296 }
  0x8e   : > { %v299_v9 = vadd.f32 %v297_v8, %v291_v6  ;;  %v300_v10 = vadd.f32 %v297_v8, %v292_v7 }
  0x90   : > { %v301_v11 = vmax.f32 %v299_v9, 0.0  ;;  %v302_v12 = vmax.f32 %v300_v10, 0.0 }
  0x92   : > { %v307_v15 = vpack.c.bf16 %v302_v12, %v302_v12  ;;  %v306_v16 = vpack.c.bf16 %v301_v11, %v301_v11 }
  0x94   : > { %522 = vmatprep.subr.msk.bf16.mxu0 %vm312_vm0, %v307_v15  ;;  %v314_v17 = vsel %vm312_vm0, %v306_v16, 0 }
  0x95   : > { %334 = vmatpush1.bf16.msra.mxu0 %v314_v17 }
  0x98   : > { %523 = vmatmul.mubr.msk.bf16.vlgmr.msra.gmra.mxu0 %vm308_vm1, %v305_v18 }
 0x158   : > { %v353_v19 = vpop.f32.mrf.mxu0 }
 0x159   : > { %362 = vst [vmem:[%s273_s12] sm:$0xff] %v353_v19  ;;  %v375_v22 = vmul.f32 %v353_v19, %v353_v19 }
 0x15a   : > { %v355_v20 = vpop.f32.mrf.mxu0 }
 0x15b   : > { %363 = vst [vmem:[%s273_s12 + $0x8] sm:$0xff] %v355_v20  ;;  %v366_v21 = vadd.f32 %v355_v20, %v353_v19  ;;  %v376_v23 = vmul.f32 %v355_v20, %v355_v20 }
 0x15c   : > { %v357_v24 = vpop.f32.mrf.mxu0 }
 0x15d   : > { %364 = vst [vmem:[%s273_s12 + $0x10] sm:$0xff] %v357_v24  ;;  %367 = vadd.xlane.f32.xlu1 %v366_v21  ;;  %v379_v25 = vadd.f32 %v376_v23, %v375_v22  ;;  %v377_v29 = vmul.f32 %v357_v24, %v357_v24 }
 0x15e   : > { %v359_v26 = vpop.f32.mrf.mxu0 }
 0x15f   : > { %365 = vst [vmem:[%s273_s12 + $0x18] sm:$0xff] %v359_v26  ;;  %v378_v27 = vmul.f32 %v359_v26, %v359_v26  ;;  %380 = vadd.xlane.f32.xlu0 %v379_v25  ;;  %v369_v28 = vadd.f32 %v359_v26, %v357_v24 }
 0x161   : > { %370 = vadd.xlane.f32.xlu1 %v369_v28  ;;  %v382_v30 = vadd.f32 %v378_v27, %v377_v29 }
 0x165   : > { %383 = vadd.xlane.f32.xlu1 %v382_v30 }
 0x1e6   : > { %v368_v31 = vpop.xlane.xlu1 %367 }
 0x1e7   : > { %373 = vst.msk [vmem:[%s280_s15] sm:$0xff] %vm372_vm2, %v368_v31 }
 0x1e8   : > { %v381_v32 = vpop.xlane.xlu0 %380 }
 0x1e9   : > { %386 = vst.msk [vmem:[%s280_s15] sm:$0xff] %vm385_vm3, %v381_v32 }
 0x1ea   : > { %v371_v33 = vpop.xlane.xlu1 %370 }
 0x1eb   : > { %374 = vst.msk [vmem:[%s280_s15 + $0x8] sm:$0xff] %vm372_vm2, %v371_v33 }
 0x1ee   : > { %v384_v34 = vpop.xlane.xlu1 %383 }
 0x1ef   : > { %387 = vst.msk [vmem:[%s280_s15 + $0x8] sm:$0xff] %vm385_vm3, %v384_v34 }
 0x1f0 PF: > { %s16_s20 = sadd.s32 1, %s577_s20   ;;  %s672_s18 = smov %s573_s19 }
 0x1f1   : > { %p13_p5 = scmp.ge.s32.totalorder %s16_s20, 4   ;;  %s673_s19 = smov %s675_s21 }
 0x1f3   :  { %15 = sbr.rel (!%p13_p5) target bundleno = 2 (0x2), region = 78 }

// kernel: forward.5
= control target key start
LH: loop header
LB: loop body
LE: loop exit
PB: predicated region body
PF: predicated region fallthrough
CT: control target
= control target key end

     0   :  { %s734_s21 = smov 0   ;;  %s856_s0 = inlined_call_operand.vmem [shape: f32[2,8,256], index: 0, kind: input, shape index: {}]   ;;  %s857_s1 = inlined_call_operand.vmem [shape: f32[8,1], index: 1, kind: input, shape index: {}]   ;;  %s858_s2 = inlined_call_operand.vmem [shape: f32[8,1], index: 2, kind: input, shape index: {}]   ;;  %s859_s3 = inlined_call_operand.vmem [shape: f32[8,72], index: 3, kind: input, shape index: {}]   ;;  %s860_s4 = inlined_call_operand.vmem [shape: f32[9,256], index: 4, kind: input, shape index: {}]   ;;  %s861_s5 = inlined_call_operand.vmem [shape: f32[2,8,256], index: 5, kind: output, shape index: {0}]   ;;  %s862_s6 = inlined_call_operand.vmem [shape: f32[2,8,2], index: 6, kind: output, shape index: {1}]  }
   0x1 LB: > { %s640_s22 = sadd.s32 4294967295, %s688_s21   ;;  %p644_p0 = scmp.ge.s32.totalorder %s688_s21, 1  ;;  %s688_s21 = sphi %s734_s21, %s17_s21  }
   0x2   : > { %p215_p1 = scmp.lt.s32.totalorder %s688_s21, 3 }
   0x4   : > { %p216_p2 = pnand %p644_p0, %p215_p1 }
   0x5   : > { %p249_p3 = scmp.lt.s32.totalorder (!%p216_p2), %s640_s22, 1  ;;  %s691_s7 = smov (!%p216_p2), 113  }
   0x6   : > { %219 = sbr.rel (%p216_p2) target bundleno = 639 (0x27f), region = 40  ;;  %s692_s8 = smov (!%p216_p2), 111  }
   0x7   : > { %s693_s9 = smov (!%p216_p2), 112   ;;  %s694_s10 = smov (!%p216_p2), 127  }
   0x8   : > { %s695_s11 = smov (!%p216_p2), 15   ;;  %s696_s12 = smov (!%p216_p2), 1  }
   0x9   : > { %s697_s13 = smov (!%p216_p2), 17   ;;  %s698_s14 = smov (!%p216_p2), 16  }
   0xb   : > { %v266_v0 = vld [vmem:[%s857_s1] sm:$0xff]  ;;  %v690_v1 = vmov 0   ;;  %s864_s22 = smov (!%p249_p3, %s640_s22), 1  ;;  %v288_v13 = vlaneseq  ;;  %v657_v16 = vld [vmem:[%s860_s4 + $0x10] ss:$8 sm:$0x3] }
   0xc   : > { %681 = vset.pattern.permute.xlu0 %v690_v1  ;;  %531 = vmatprep.mubr.bf16.mxu0 %v690_v1  ;;  %v274_v2 = vld [vmem:[%s858_s2] sm:$0xff]  ;;  %s662_s27 = sshll.u32 %s864_s22, 4  ;;  %vm492_vm1 = vcmask 1043456   ;;  %vm488_vm9 = vcmask 588800   ;;  %s649_s17 = sshll.u32 %s864_s22, 3  ;;  %vm545_vm10 = vcmask 7168  }
   0xd   : > { %269 = vperm.xlu0 %681, %v266_v0   ;;  %s253_s30 = scalar_lea.vmem %s856_s0, %s662_s27  ;;  %v296_v14 = vshrl.u32 %v288_v13, 7  ;;  %v776_v15 = vand.u32 127, %v288_v13  ;;  %v655_v28 = vld [vmem:[%s860_s4 + $0x6] ss:$8 sm:$0x3]  ;;  %s258_s16 = scalar_lea.vmem %s861_s5, %s662_s27  ;;  %vm552_vm11 = vcmask 15368  }
   0xe   : > { %v264_v4 = vld [vmem:[%s253_s30] sm:$0xff]  ;;  %v265_v5 = vld [vmem:[%s253_s30 + $0x8] sm:$0xff]  ;;  %s262_s20 = scalar_lea.vmem %s862_s6, %s649_s17 }
   0xf   : > { %v781_v19 = vsub.s32 0, %v296_v14  ;;  %v783_v20 = vsub.s32 1, %v296_v14  ;;  %vm458_vm0 = vcmp.lt.s32.totalorder %v776_v15, 111  ;;  %v656_v30 = vld [vmem:[%s860_s4 + $0x7] ss:$8 sm:$0x3] }
  0x10   : > { %vm414_vm2 = vcmp.lt.s32.totalorder %v776_v15, 113  ;;  %v653_v37 = vld [vmem:[%s860_s4 + $0x4] ss:$8 sm:$0x3]  ;;  %vm436_vm3 = vcmp.lt.s32.totalorder %v776_v15, 112  ;;  %vm392_vm4 = vcmp.lt.s32.totalorder %v776_v15, 127 }
  0x11   : > { %277 = vperm.xlu0 %681, %v274_v2   ;;  %v467_v21 = vrot.slane %v657_v16, %v781_v19  ;;  %v471_v22 = vrot.slane %v657_v16, %v783_v20  ;;  %v423_v35 = vrot.slane %v655_v28, %v781_v19  ;;  %v427_v36 = vrot.slane %v655_v28, %v783_v20  ;;  %v654_v41 = vld [vmem:[%s860_s4 + $0x5] ss:$8 sm:$0x3]  ;;  %v651_v63 = vld [vmem:[%s860_s4 + $0x2] ss:$8 sm:$0x3] }
  0x12   : > { %v445_v39 = vrot.slane %v656_v30, %v781_v19  ;;  %v449_v40 = vrot.slane %v656_v30, %v783_v20  ;;  %v383_v45 = vrot.slane %v653_v37, %v783_v20  ;;  %v379_v46 = vrot.slane %v653_v37, %v781_v19  ;;  %v652_v2 = vld [vmem:[%s860_s4 + $0x3] ss:$8 sm:$0x3] }
  0x13   : > { %v401_v49 = vrot.slane %v654_v41, %v781_v19  ;;  %v405_v50 = vrot.slane %v654_v41, %v783_v20  ;;  %vm333_vm5 = vcmp.lt.s32.totalorder %v776_v15, 15  ;;  %vm355_vm6 = vcmp.lt.s32.totalorder %v776_v15, 1 }
  0x14   : > { %vm290_vm7 = vcmp.lt.s32.totalorder %v776_v15, 17  ;;  %vm311_vm8 = vcmp.lt.s32.totalorder %v776_v15, 16  ;;  %v486_v15 = vld [vmem:[%s859_s3] sm:$0xff] }
  0x88   : > { %v270_v3 = vpop.permute.xlu0 %269 }
  0x89   : > { %v272_v6 = vmul.f32 %v270_v3, %v264_v4  ;;  %v273_v8 = vmul.f32 %v270_v3, %v265_v5 }
  0x8c   : > { %v278_v7 = vpop.permute.xlu0 %277 }
  0x8d   : > { %v280_v9 = vadd.f32 %v278_v7, %v272_v6  ;;  %v281_v10 = vadd.f32 %v278_v7, %v273_v8  ;;  %v342_v7 = vrot.slane %v651_v63, %v781_v19  ;;  %v346_v8 = vrot.slane %v651_v63, %v783_v20 }
  0x8f   : > { %v756_v11 = vmax.f32 %v280_v9, 0.0  ;;  %v760_v12 = vmax.f32 %v281_v10, 0.0  ;;  %v364_v9 = vrot.slane %v652_v2, %v781_v19  ;;  %v368_v10 = vrot.slane %v652_v2, %v783_v20 }
  0x91   : > { %410 = vrot.lane.b32.xlu0 %v756_v11, %s691_s7  ;;  %454 = vrot.lane.b32.xlu1 %v756_v11, %s692_s8  ;;  %v387_v0 = vmul.f32 %v383_v45, %v760_v12  ;;  %v386_v1 = vmul.f32 %v379_v46, %v756_v11 }
  0x95   : > { %432 = vrot.lane.b32.xlu0 %v756_v11, %s693_s9  ;;  %456 = vrot.lane.b32.xlu1 %v760_v12, %s692_s8 }
  0x99   : > { %388 = vrot.lane.b32.xlu0 %v756_v11, %s694_s10  ;;  %412 = vrot.lane.b32.xlu1 %v760_v12, %s691_s7 }
  0x9d   : > { %329 = vrot.lane.b32.xlu0 %v756_v11, %s695_s11  ;;  %434 = vrot.lane.b32.xlu1 %v760_v12, %s693_s9 }
  0xa1   : > { %351 = vrot.lane.b32.xlu0 %v756_v11, %s696_s12  ;;  %390 = vrot.lane.b32.xlu1 %v760_v12, %s694_s10 }
  0xa5   : > { %284 = vrot.lane.b32.xlu0 %v756_v11, %s697_s13  ;;  %331 = vrot.lane.b32.xlu1 %v760_v12, %s695_s11 }
  0xa9   : > { %307 = vrot.lane.b32.xlu0 %v756_v11, %s698_s14  ;;  %353 = vrot.lane.b32.xlu1 %v760_v12, %s696_s12 }
  0xad   : > { %286 = vrot.lane.b32.xlu1 %v760_v12, %s697_s13 }
  0xb1   : > { %309 = vrot.lane.b32.xlu1 %v760_v12, %s698_s14 }
 0x103   : > { %v411_v17 = vpop.permute.xlu0 %410  ;;  %v455_v18 = vpop.permute.xlu1 %454 }
 0x107   : > { %v433_v23 = vpop.permute.xlu0 %432  ;;  %v457_v24 = vpop.permute.xlu1 %456 }
 0x108   : > { %v459_v25 = vsel %vm458_vm0, %v455_v18, %v457_v24  ;;  %v460_v26 = vsel %vm458_vm0, %v457_v24, %v455_v18  ;;  %v293_v24 = vld [vmem:[%s860_s4] ss:$8 sm:$0x3] }
 0x109   : > { %v474_v27 = vmul.f32 %v467_v21, %v459_v25  ;;  %v475_v29 = vmul.f32 %v471_v22, %v460_v26  ;;  %v650_v25 = vld [vmem:[%s860_s4 + $0x1] ss:$8 sm:$0x3]  ;;  %v302_v30 = vrot.slane %v293_v24, %v783_v20 }
 0x10b   : > { %v389_v31 = vpop.permute.xlu0 %388  ;;  %v413_v32 = vpop.permute.xlu1 %412  ;;  %v485_v33 = vpack.c.bf16 %v475_v29, %v475_v29  ;;  %v484_v34 = vpack.c.bf16 %v474_v27, %v474_v27  ;;  %v298_v29 = vrot.slane %v293_v24, %v781_v19 }
 0x10c   : > { %v415_v42 = vsel %vm414_vm2, %v411_v17, %v413_v32  ;;  %v416_v43 = vsel %vm414_vm2, %v413_v32, %v411_v17  ;;  %v324_v32 = vrot.slane %v650_v25, %v783_v20  ;;  %v487_v20 = vpack.c.bf16 %v486_v15, %v486_v15 }
 0x10d   : > { %658 = vmatprep.subr.msk.bf16.mxu0 %vm492_vm1, %v485_v33  ;;  %v494_v38 = vsel %vm492_vm1, %v484_v34, 0  ;;  %v430_v51 = vmul.f32 %v423_v35, %v415_v42  ;;  %v431_v52 = vmul.f32 %v427_v36, %v416_v43 }
 0x10e   : > { %506 = vmatpush1.bf16.msra.mxu0 %v494_v38 }
 0x10f   : > { %v435_v44 = vpop.permute.xlu1 %434  ;;  %v330_v53 = vpop.permute.xlu0 %329 }
 0x110   : > { %v437_v47 = vsel %vm436_vm3, %v433_v23, %v435_v44  ;;  %v438_v48 = vsel %vm436_vm3, %v435_v44, %v433_v23 }
 0x111   : > { %v452_v54 = vmul.f32 %v445_v39, %v437_v47  ;;  %v453_v55 = vmul.f32 %v449_v40, %v438_v48 }
 0x113   : > { %v391_v56 = vpop.permute.xlu1 %390  ;;  %v483_v57 = vpack.c.bf16 %v453_v55, %v431_v52  ;;  %v482_v58 = vpack.c.bf16 %v452_v54, %v430_v51  ;;  %v352_v3 = vpop.permute.xlu0 %351 }
 0x114   : > { %v393_v59 = vsel %vm392_vm4, %v389_v31, %v391_v56  ;;  %v394_v60 = vsel %vm392_vm4, %v391_v56, %v389_v31  ;;  %v320_v31 = vrot.slane %v650_v25, %v781_v19 }
 0x115   : > { %v408_v61 = vmul.f32 %v401_v49, %v393_v59  ;;  %v409_v62 = vmul.f32 %v405_v50, %v394_v60  ;;  %507 = vmatprep.subr.bf16.mxu0 %v483_v57 }
 0x116   : > { %508 = vmatpush1.bf16.msra.mxu0 %v482_v58 }
 0x117   : > { %v332_v4 = vpop.permute.xlu1 %331  ;;  %v481_v5 = vpack.c.bf16 %v409_v62, %v387_v0  ;;  %v480_v6 = vpack.c.bf16 %v408_v61, %v386_v1  ;;  %v285_v17 = vpop.permute.xlu0 %284 }
 0x118   : > { %v334_v11 = vsel %vm333_vm5, %v330_v53, %v332_v4  ;;  %v335_v12 = vsel %vm333_vm5, %v332_v4, %v330_v53 }
 0x119   : > { %509 = vmatprep.subr.bf16.mxu0 %v481_v5  ;;  %v349_v18 = vmul.f32 %v342_v7, %v335_v12  ;;  %v350_v21 = vmul.f32 %v346_v8, %v334_v11 }
 0x11a   : > { %510 = vmatpush1.bf16.msra.mxu0 %v480_v6 }
 0x11b   : > { %v354_v13 = vpop.permute.xlu1 %353  ;;  %v308_v35 = vpop.permute.xlu0 %307 }
 0x11c   : > { %v356_v14 = vsel %vm355_vm6, %v352_v3, %v354_v13  ;;  %v357_v16 = vsel %vm355_vm6, %v354_v13, %v352_v3 }
 0x11d   : > { %v371_v22 = vmul.f32 %v364_v9, %v357_v16  ;;  %v372_v23 = vmul.f32 %v368_v10, %v356_v14 }
 0x11f   : > { %v287_v26 = vpop.permute.xlu1 %286  ;;  %v479_v27 = vpack.c.bf16 %v372_v23, %v350_v21  ;;  %v478_v28 = vpack.c.bf16 %v371_v22, %v349_v18 }
 0x120   : > { %v291_v33 = vsel %vm290_vm7, %v285_v17, %v287_v26  ;;  %v292_v34 = vsel %vm290_vm7, %v287_v26, %v285_v17 }
 0x121   : > { %511 = vmatprep.subr.bf16.mxu0 %v479_v27  ;;  %v305_v39 = vmul.f32 %v298_v29, %v292_v34  ;;  %v306_v40 = vmul.f32 %v302_v30, %v291_v33 }
 0x122   : > { %512 = vmatpush1.bf16.msra.mxu0 %v478_v28 }
 0x123   : > { %v310_v36 = vpop.permute.xlu1 %309 }
 0x124   : > { %v312_v37 = vsel %vm311_vm8, %v308_v35, %v310_v36  ;;  %v313_v38 = vsel %vm311_vm8, %v310_v36, %v308_v35 }
 0x125   : > { %v327_v41 = vmul.f32 %v320_v31, %v313_v38  ;;  %v328_v42 = vmul.f32 %v324_v32, %v312_v37 }
 0x127   : > { %v477_v43 = vpack.c.bf16 %v328_v42, %v306_v40  ;;  %v476_v19 = vpack.c.bf16 %v327_v41, %v305_v39 }
 0x129   : > { %513 = vmatprep.subr.bf16.mxu0 %v477_v43 }
 0x12a   : > { %514 = vmatpush1.bf16.msra.mxu0 %v476_v19 }
 0x12d   : > { %659 = vmatmul.mubr.msk.bf16.vlgmr.msra.gmra.mxu0 %vm488_vm9, %v487_v20 }
 0x1ed   : > { %v533_v44 = vpop.f32.mrf.mxu0 }
 0x1ee   : > { %540 = vst [vmem:[%s258_s16] sm:$0xff] %v533_v44  ;;  %v547_v47 = vmul.f32 %v533_v44, %v533_v44 }
 0x1ef   : > { %v535_v45 = vpop.f32.mrf.mxu0 }
 0x1f0   : > { %541 = vst [vmem:[%s258_s16 + $0x8] sm:$0xff] %v535_v45  ;;  %v542_v46 = vadd.f32 %v535_v45, %v533_v44  ;;  %v548_v48 = vmul.f32 %v535_v45, %v535_v45 }
 0x1f1   : > { %v537_v49 = vpop.f32.mrf.mxu0 }
 0x1f2   : > { %543 = vadd.xlane.f32.xlu0 %v542_v46  ;;  %v549_v50 = vadd.f32 %v548_v48, %v547_v47 }
 0x1f3   : > { %v538_v51 = vpop.f32.mrf.mxu0 }
 0x1f4   : > { %550 = vadd.xlane.f32.xlu1 %v549_v50 }
 0x27b   : > { %v544_v52 = vpop.xlane.xlu0 %543 }
 0x27c   : > { %546 = vst.msk [vmem:[%s262_s20] sm:$0xff] %vm545_vm10, %v544_v52 }
 0x27d   : > { %v551_v53 = vpop.xlane.xlu1 %550 }
 0x27e   : > { %553 = vst.msk [vmem:[%s262_s20] sm:$0xff] %vm552_vm11, %v551_v53 }
 0x27f PF: > { %s17_s21 = sadd.s32 1, %s688_s21  }
 0x280   : > { %p14_p4 = scmp.ge.s32.totalorder %s17_s21, 4  }
 0x282   :  { %16 = sbr.rel (!%p14_p4) target bundleno = 1 (0x1), region = 90 }

// kernel: forward.7
= control target key start
LH: loop header
LB: loop body
LE: loop exit
PB: predicated region body
PF: predicated region fallthrough
CT: control target
= control target key end

     0   :  { %s662_s21 = smov 0   ;;  %s664_s22 = smov 0   ;;  %s726_s0 = inlined_call_operand.vmem [shape: f32[2,16,256], index: 0, kind: input, shape index: {}]   ;;  %s727_s1 = inlined_call_operand.vmem [shape: f32[16,1], index: 1, kind: input, shape index: {}]   ;;  %s728_s2 = inlined_call_operand.vmem [shape: f32[16,1], index: 2, kind: input, shape index: {}]   ;;  %s729_s3 = inlined_call_operand.vmem [shape: f32[2,4,256], index: 3, kind: input, shape index: {}]   ;;  %s730_s4 = inlined_call_operand.vmem [shape: f32[16,4], index: 4, kind: input, shape index: {}]   ;;  %s731_s5 = inlined_call_operand.vmem [shape: f32[16,1], index: 5, kind: input, shape index: {}]   ;;  %s732_s6 = inlined_call_operand.vmem [shape: f32[2,16,256], index: 6, kind: output, shape index: {}]  }
   0x1   :  { %s666_s23 = smov 0  }
   0x2 LB: > { %s28_s24 = sadd.s32 1, %s620_s22  ;;  %p560_p0 = scmp.ge.s32.totalorder %s624_s23, 1  ;;  %s624_s23 = sphi %s666_s23, %s16_s23   ;;  %s620_s22 = sphi %s664_s22, %s734_s22   ;;  %s616_s21 = sphi %s662_s21, %s733_s21  }
   0x3   : > { %p30_p1 = scmp.ge.s32.totalorder %s28_s24, 2  ;;  %p250_p2 = scmp.lt.s32.totalorder %s624_s23, 3 }
   0x5   : > { %s736_s24 = smov (%p30_p1, %s28_s24), 0  ;;  %p251_p3 = pnand %p560_p0, %p250_p2 }
   0x6   : > { %p298_p4 = scmp.lt.s32.totalorder (!%p251_p3), %s616_s21, 1 }
   0x7   : > { %254 = sbr.rel (%p251_p3) target bundleno = 230 (0xe6), region = 44 }
   0xc   : > { %v626_v0 = vmov 0   ;;  %v348_v1 = vld [vmem:[%s728_s2] sm:$0xff]  ;;  %s738_s21 = smov (!%p298_p4, %s616_s21), 1  ;;  %v349_v3 = vld [vmem:[%s728_s2 + $0x8] sm:$0xff]  ;;  %vm389_vm0 = vcmask 1041408   ;;  %vm385_vm1 = vcmask 31744  }
   0xd   : > { %428 = vmatprep.mubr.bf16.mxu0 %v626_v0  ;;  %600 = vset.pattern.permute.xlu1 %v626_v0  ;;  %v332_v2 = vld [vmem:[%s727_s1] sm:$0xff]  ;;  %s572_s7 = sshll.u32 %s738_s21, 3  ;;  %v333_v4 = vld [vmem:[%s727_s1 + $0x8] sm:$0xff]  ;;  %s571_s25 = sshll.u32 %s738_s21, 5 }
   0xe   : > { %599 = vset.pattern.permute.xlu0 %v626_v0  ;;  %352 = vperm.xlu1 %600, %v348_v1   ;;  %s315_s12 = scalar_lea.vmem %s729_s3, %s572_s7  ;;  %v374_v8 = vld [vmem:[%s731_s5 + $0x8] sm:$0xff]  ;;  %v364_v9 = vld [vmem:[%s730_s4] sm:$0xff]  ;;  %s305_s28 = scalar_lea.vmem %s726_s0, %s571_s25 }
   0xf   : > { %336 = vperm.xlu0 %599, %v332_v2   ;;  %v367_v5 = vld [vmem:[%s315_s12] sm:$0xff]  ;;  %v365_v10 = vld [vmem:[%s730_s4 + $0x8] sm:$0xff]  ;;  %v330_v22 = vld [vmem:[%s305_s28 + $0x10] sm:$0xff]  ;;  %s325_s30 = scalar_lea.vmem %s732_s6, %s571_s25 }
  0x10   : > { %v369_v6 = vcombine.high %v367_v5, %v367_v5  ;;  %v371_v7 = vpack.c.bf16 %v367_v5, %v367_v5  ;;  %v373_v11 = vld [vmem:[%s731_s5] sm:$0xff]  ;;  %v366_v14 = vpack.c.bf16 %v365_v10, %v364_v9  ;;  %v329_v19 = vld [vmem:[%s305_s28 + $0x8] sm:$0xff]  ;;  %v331_v24 = vld [vmem:[%s305_s28 + $0x18] sm:$0xff] }
  0x11   : > { %v328_v17 = vld [vmem:[%s305_s28] sm:$0xff] }
  0x12   : > { %357 = vperm.xlu1 %600, %v349_v3   ;;  %v372_v12 = vpack.c.bf16 %v369_v6, %v369_v6  ;;  %v391_v13 = vsel %vm389_vm0, %v371_v7, 0 }
  0x13   : > { %341 = vperm.xlu0 %599, %v333_v4  }
  0x14   : > { %567 = vmatprep.subr.msk.bf16.mxu0 %vm389_vm0, %v372_v12 }
  0x15   : > { %411 = vmatpush1.bf16.msra.mxu0 %v391_v13 }
  0x16   : > { %382 = vperm.xlu1 %600, %v374_v8  }
  0x17   : > { %377 = vperm.xlu0 %599, %v373_v11  }
  0x18   : > { %568 = vmatmul.mubr.msk.bf16.vlgmr.msra.gmra.mxu0 %vm385_vm1, %v366_v14 }
  0x89   : > { %v353_v16 = vpop.permute.xlu1 %352 }
  0x8a   : > { %v337_v15 = vpop.permute.xlu0 %336 }
  0x8b   : > { %v344_v20 = vmul.f32 %v337_v15, %v328_v17  ;;  %v345_v23 = vmul.f32 %v337_v15, %v329_v19 }
  0x8d   : > { %v358_v21 = vpop.permute.xlu1 %357  ;;  %v360_v27 = vadd.f32 %v353_v16, %v344_v20  ;;  %v361_v31 = vadd.f32 %v353_v16, %v345_v23 }
  0x8e   : > { %v342_v18 = vpop.permute.xlu0 %341 }
  0x8f   : > { %v346_v28 = vmul.f32 %v342_v18, %v330_v22  ;;  %v347_v32 = vmul.f32 %v342_v18, %v331_v24 }
  0x91   : > { %v383_v35 = vpop.permute.xlu1 %382  ;;  %v362_v37 = vadd.f32 %v358_v21, %v346_v28  ;;  %v363_v42 = vadd.f32 %v358_v21, %v347_v32 }
  0x92   : > { %v378_v25 = vpop.permute.xlu0 %377 }
  0xd8   : > { %v430_v26 = vpop.f32.mrf.mxu0 }
  0xd9   : > { %v431_v29 = vadd.f32 %v430_v26, %v378_v25 }
  0xda   : > { %v432_v30 = vpop.f32.mrf.mxu0 }
  0xdb   : > { %v439_v33 = vadd.f32 %v431_v29, %v360_v27  ;;  %v433_v34 = vadd.f32 %v432_v30, %v378_v25 }
  0xdc   : > { %v434_v36 = vpop.f32.mrf.mxu0 }
  0xdd   : > { %v443_v38 = vmax.f32 %v439_v33, 0.0  ;;  %v440_v39 = vadd.f32 %v433_v34, %v361_v31  ;;  %v435_v40 = vadd.f32 %v434_v36, %v383_v35 }
  0xde   : > { %v436_v41 = vpop.f32.mrf.mxu0 }
  0xdf   : > { %447 = vst [vmem:[%s325_s30] sm:$0xff] %v443_v38  ;;  %v444_v43 = vmax.f32 %v440_v39, 0.0  ;;  %v441_v44 = vadd.f32 %v435_v40, %v362_v37  ;;  %v437_v45 = vadd.f32 %v436_v41, %v383_v35 }
  0xe1   : > { %448 = vst [vmem:[%s325_s30 + $0x8] sm:$0xff] %v444_v43  ;;  %v445_v46 = vmax.f32 %v441_v44, 0.0  ;;  %v442_v47 = vadd.f32 %v437_v45, %v363_v42 }
  0xe3   : > { %449 = vst [vmem:[%s325_s30 + $0x10] sm:$0xff] %v445_v46  ;;  %v446_v48 = vmax.f32 %v442_v47, 0.0 }
  0xe5   : > { %450 = vst [vmem:[%s325_s30 + $0x18] sm:$0xff] %v446_v48 }
  0xe6 PF: > { %s16_s23 = sadd.s32 1, %s624_s23   ;;  %s733_s21 = smov %s620_s22 }
  0xe7   : > { %p13_p5 = scmp.ge.s32.totalorder %s16_s23, 4   ;;  %s734_s22 = smov %s736_s24 }
  0xe9   :  { %15 = sbr.rel (!%p13_p5) target bundleno = 2 (0x2), region = 77 }

</bundles_post_ra>
